<compile_context>
chip_gen: v7x
topology: tpu7x:2x2x1
jax: 0.10.0
libtpu: 0.0.40
codegen_flags: <defaults>
</compile_context>

<pallas_src>
import functools

import jax
import jax.numpy as jnp
from jax.experimental import pallas as pl
from jax.experimental.pallas import tpu as pltpu

_LANES = 128
_SUBLANES = 8


def _ensemble_mlp_kernel(w_ref, b_ref, xt_ref, o_ref):
    # w_ref: (3,) f32 in SMEM, b_ref: (1,) f32 in SMEM.
    # xt_ref: (3, R, 128) f32 in VMEM (feature-major, lane/sublane dense).
    # o_ref:  (R, 128) f32 in VMEM.
    w0 = w_ref[0]
    w1 = w_ref[1]
    w2 = w_ref[2]
    b = b_ref[0]
    # Three VPU FMAs over dense (R,128) slabs; K=3, N=1 would waste the MXU.
    z = w0 * xt_ref[0] + w1 * xt_ref[1] + w2 * xt_ref[2] + b      # (R, 128)
    o_ref[...] = jax.nn.sigmoid(z).astype(o_ref.dtype)


@functools.partial(jax.jit, static_argnames=("rows_per_block",))
def ensemble_mlp(x, weight, bias, *, rows_per_block=512):
    """x: (B, 3) f32; weight: (1, 3) f32 (PyTorch Linear layout); bias: (1,) f32.

    Returns y: (B, 1) f32 = sigmoid(x @ weight.T + bias).
    """
    assert rows_per_block % _SUBLANES == 0, "rows_per_block must be a multiple of 8"
    B = x.shape[0]

    n_rows = pl.cdiv(B, _LANES)                 # rows of the (rows, 128) layout
    if n_rows <= rows_per_block:
        # Small-B fast path: single grid step, block == full array, pad batch
        # only up to the next multiple of 128 lanes.
        rows_block = n_rows
        n_rows_pad = n_rows
    else:
        rows_block = rows_per_block
        n_rows_pad = pl.cdiv(n_rows, rows_per_block) * rows_per_block
    b_pad = n_rows_pad * _LANES

    # Feature-major, lane/sublane-dense input layout; transpose + pad + reshape
    # fuse into one XLA copy under jit.
    # TODO(synk): accept x already feature-major from the producer (and at the
    # module's real B~8 scale, fuse this op into the surrounding XLA graph).
    xt = x.T                                                     # (3, B)
    if b_pad != B:
        xt = jnp.pad(xt, ((0, 0), (0, b_pad - B)))
    xt = xt.reshape(3, n_rows_pad, _LANES)

    w_s = weight.reshape(3).astype(jnp.float32)                  # SMEM scalars
    b_s = bias.reshape(1).astype(jnp.float32)

    grid = (n_rows_pad // rows_block,)

    y2d = pl.pallas_call(
        _ensemble_mlp_kernel,
        out_shape=jax.ShapeDtypeStruct((n_rows_pad, _LANES), jnp.float32),
        grid=grid,
        in_specs=[
            pl.BlockSpec(memory_space=pltpu.MemorySpace.SMEM),            # weight (3,)
            pl.BlockSpec(memory_space=pltpu.MemorySpace.SMEM),            # bias (1,)
            pl.BlockSpec((3, rows_block, _LANES), lambda i: (0, i, 0)),   # x slab
        ],
        out_specs=pl.BlockSpec((rows_block, _LANES), lambda i: (i, 0)),   # dense out
        compiler_params=pltpu.CompilerParams(
            dimension_semantics=("parallel",),
        ),
    )(w_s, b_s, xt)

    # Free (row-major preserving) reshape + slice back to (B, 1); no transpose copy.
    return y2d.reshape(b_pad, 1)[:B]


if __name__ == "__main__":
    # Deterministic parameters, matching the module's __init__ exactly.
    weight = jnp.full((1, 3), 1.0 / 3, dtype=jnp.float32)   # Linear(3, 1).weight
    bias = jnp.zeros((1,), dtype=jnp.float32)                # Linear(3, 1).bias

    # Small deterministic input consistent with forward(): (batch=8, features=3).
    key = jax.random.PRNGKey(0)
    x = jax.random.normal(key, (8, 3), dtype=jnp.float32)

    y = ensemble_mlp(x, weight, bias)
    y = jax.block_until_ready(y)

    # Reference check in plain JAX.
    y_ref = jax.nn.sigmoid(x @ weight.T + bias)
    assert y.shape == (8, 1), y.shape
    assert jnp.allclose(y, y_ref, atol=1e-6, rtol=1e-6), (y, y_ref)

    print("KERNEL_OK")
</pallas_src>

<mosaic_0001>
module attributes {stable_mosaic.version = 11 : i64} {
  func.func @_ensemble_mlp_kernel(%arg0: i32, %arg1: memref<3xf32, #tpu.memory_space<smem>>, %arg2: memref<1xf32, #tpu.memory_space<smem>>, %arg3: memref<3x1x128xf32, #tpu.memory_space<vmem>>, %arg4: memref<1x128xf32, #tpu.memory_space<vmem>>) attributes {dimension_semantics = [#tpu.dimension_semantics<parallel>], iteration_bounds = array<i64: 1>, scalar_prefetch = 0 : i64, scratch_operands = 0 : i64, tpu.core_type = #tpu.core_type<tc>, window_params = [{transform_indices = @transform_0, window_bounds = array<i64: 3>}, {transform_indices = @transform_1, window_bounds = array<i64: 1>}, {transform_indices = @transform_2, window_bounds = array<i64: 3, 1, 128>}, {transform_indices = @transform_3, window_bounds = array<i64: 1, 128>}]} {
    %c0 = arith.constant 0 : index
    %0 = memref.load %arg1[%c0] : memref<3xf32, #tpu.memory_space<smem>>
    %c1 = arith.constant 1 : index
    %1 = memref.load %arg1[%c1] : memref<3xf32, #tpu.memory_space<smem>>
    %c2 = arith.constant 2 : index
    %2 = memref.load %arg1[%c2] : memref<3xf32, #tpu.memory_space<smem>>
    %c0_0 = arith.constant 0 : index
    %3 = memref.load %arg2[%c0_0] : memref<1xf32, #tpu.memory_space<smem>>
    %c0_1 = arith.constant 0 : index
    %c0_2 = arith.constant 0 : index
    %c0_3 = arith.constant 0 : index
    %4 = vector.load %arg3[%c0_1, %c0_2, %c0_3] : memref<3x1x128xf32, #tpu.memory_space<vmem>>, vector<1x1x128xf32>
    %5 = vector.shape_cast %4 : vector<1x1x128xf32> to vector<1x128xf32>
    %6 = vector.broadcast %0 : f32 to vector<1x128xf32>
    %7 = arith.mulf %6, %5 : vector<1x128xf32>
    %c1_4 = arith.constant 1 : index
    %c0_5 = arith.constant 0 : index
    %c0_6 = arith.constant 0 : index
    %8 = vector.load %arg3[%c1_4, %c0_5, %c0_6] : memref<3x1x128xf32, #tpu.memory_space<vmem>>, vector<1x1x128xf32>
    %9 = vector.shape_cast %8 : vector<1x1x128xf32> to vector<1x128xf32>
    %10 = vector.broadcast %1 : f32 to vector<1x128xf32>
    %11 = arith.mulf %10, %9 : vector<1x128xf32>
    %12 = arith.addf %7, %11 : vector<1x128xf32>
    %c2_7 = arith.constant 2 : index
    %c0_8 = arith.constant 0 : index
    %c0_9 = arith.constant 0 : index
    %13 = vector.load %arg3[%c2_7, %c0_8, %c0_9] : memref<3x1x128xf32, #tpu.memory_space<vmem>>, vector<1x1x128xf32>
    %14 = vector.shape_cast %13 : vector<1x1x128xf32> to vector<1x128xf32>
    %15 = vector.broadcast %2 : f32 to vector<1x128xf32>
    %16 = arith.mulf %15, %14 : vector<1x128xf32>
    %17 = arith.addf %12, %16 : vector<1x128xf32>
    %18 = vector.broadcast %3 : f32 to vector<1x128xf32>
    %19 = arith.addf %17, %18 : vector<1x128xf32>
    %20 = arith.negf %19 : vector<1x128xf32>
    %21 = math.exp %20 : vector<1x128xf32>
    %cst = arith.constant 1.000000e+00 : f32
    %22 = vector.broadcast %cst : f32 to vector<1x128xf32>
    %23 = arith.addf %22, %21 : vector<1x128xf32>
    %24 = arith.divf %22, %23 : vector<1x128xf32>
    %c0_10 = arith.constant 0 : index
    %c0_11 = arith.constant 0 : index
    %25 = vector.load %arg4[%c0_10, %c0_11] : memref<1x128xf32, #tpu.memory_space<vmem>>, vector<1x128xf32>
    tpu.vector_store %arg4[%c0_10, %c0_11], %24 {strides = array<i32>} : memref<1x128xf32, #tpu.memory_space<vmem>>, vector<1x128xf32>,
    return
  }
  func.func @transform_0(%arg0: i32) -> i32 {
    %c0_i32 = arith.constant 0 : i32
    %c0_i32_0 = arith.constant 0 : i32
    return %c0_i32 : i32
  }
  func.func @transform_1(%arg0: i32) -> i32 {
    %c0_i32 = arith.constant 0 : i32
    %c0_i32_0 = arith.constant 0 : i32
    return %c0_i32 : i32
  }
  func.func @transform_2(%arg0: i32) -> (i32, i32, i32) {
    %c0_i32 = arith.constant 0 : i32
    %c0_i32_0 = arith.constant 0 : i32
    %c0_i32_1 = arith.constant 0 : i32
    return %c0_i32, %arg0, %c0_i32_0 : i32, i32, i32
  }
  func.func @transform_3(%arg0: i32) -> (i32, i32) {
    %c0_i32 = arith.constant 0 : i32
    %c0_i32_0 = arith.constant 0 : i32
    return %arg0, %c0_i32 : i32, i32
  }
}

</mosaic_0001>

<bundles_post_ra>
// kernel: ensemble_mlp.1
= control target key start
LH: loop header
LB: loop body
LE: loop exit
PB: predicated region body
PF: predicated region fallthrough
CT: control target
= control target key end

     0   :  { %9 = vsyncpa [#allocation4], 0  ;;  %s122_s0 = inlined_call_operand.vmem [shape: f32[3], index: 0, kind: input, shape index: {}]   ;;  %s123_s1 = inlined_call_operand.<no memory space> [shape: f32[1], index: 1, kind: input, shape index: {}]   ;;  %s124_s2 = inlined_call_operand.vmem [shape: f32[3,1,128], index: 2, kind: input, shape index: {}]   ;;  %s125_s3 = inlined_call_operand.vmem [shape: f32[1,128], index: 3, kind: output, shape index: {}]  }
   0x1   :  { %s16_s14 = sshll.u32 %s122_s0, 4  ;;  %s17_s14 = int_to_ptr.vmem [resolvable:$true] %s16_s14 }
   0x2   :  { %s69_s15 = scalar_lea.vmem %s17_s14, 16  ;;  %p74_p1 = scmp.lt.s32.totalorder %s17_s14, %s17_s14 }
   0x3   :  { %p70_p0 = scmp.ne.s32.totalorder %s17_s14, %s69_s15  ;;  %p75_p2 = scmp.lt.s32.totalorder %s69_s15, %s69_s15 }
   0x5   :  { %p76_p3 = por %p75_p2, %p74_p1 }
   0x7   :  { %p77_p4 = pnand %p76_p3, %p70_p0 }
   0x9   :  { %80 = shalt.err (!%p77_p4)
}
   0xa   :  { %s83_s16 = smov [#allocation3]  }
   0xb   :  { %19 = dma.vmem_to_smem %s17_s14, 16, %s83_s16, [#allocation4]  }
   0xc   :  { %81 = dma.done.wait [#allocation4], 16  }
   0xd   :  { %82 = vsyncadd [#allocation4], 4294967280 }
   0xe   :  { %27 = sfence }
   0xf   :  { %s28_s17 = sld [smem:[#allocation3]]  ;;  %s59_s18 = sld [smem:[#allocation3 + $0x1]]  ;;  %v32_v0 = vld [vmem:[%s124_s2] sm:$0x1]  ;;  %v61_v1 = vld [vmem:[%s124_s2 + $0x1] sm:$0x1]  ;;  %v45_v10 = vstv %s123_s1 }
  0x10   :  { %s60_s19 = sld [smem:[#allocation3 + $0x2]]  ;;  %v62_v2 = vld [vmem:[%s124_s2 + $0x2] sm:$0x1] }
  0x15   :  { %v33_v3 = vstv %s28_s17  ;;  %v37_v4 = vstv %s59_s18 }
  0x16   :  { %v34_v5 = vmul.f32 %v33_v3, %v32_v0  ;;  %v38_v6 = vmul.f32 %v61_v1, %v37_v4  ;;  %v42_v7 = vstv %s60_s19 }
  0x17   :  { %v43_v8 = vmul.f32 %v62_v2, %v42_v7 }
  0x18   :  { %v39_v9 = vadd.f32 %v38_v6, %v34_v5 }
  0x1a   :  { %v44_v11 = vadd.f32 %v43_v8, %v39_v9 }
  0x1c   :  { %v46_v12 = vadd.f32 %v45_v10, %v44_v11 }
  0x1e   :  { %v63_v13 = vmul.f32 -1.442695, %v46_v12 }
  0x20   :  { %65 = vpow2.f32 %v63_v13 }
  0x2a   :  { %v66_v14 = vpop.eup %65 }
  0x2b   :  { %v50_v15 = vadd.f32 1.0, %v66_v14 }
  0x2d   :  { %67 = vrcp.f32 %v50_v15 }
  0x37   :  { %v68_v16 = vpop.eup %67 }
  0x38   :  { %53 = vst [vmem:[%s125_s3] sm:$0x1] %v68_v16 }
  0x39   :  { %58 = vsyncpa [#allocation4], 1 }

</bundles_post_ra>
